<compile_context>
chip_gen: v7x
topology: tpu7x:2x2x1
jax: 0.10.0
libtpu: 0.0.40
codegen_flags: <defaults>
</compile_context>

<pallas_src>
import jax
import jax.numpy as jnp
from jax.experimental import pallas as pl
from jax.experimental.pallas import tpu as pltpu


def _linreg_kernel(x_ref, w_ref, b_ref, o_ref):
    """One batch tile of y = X @ w + b for a single output column.

    x_ref: (TILE_B, D) VMEM tile of X (streamed over the grid)
    w_ref: (1, D)      VMEM, resident across all grid steps
    b_ref: (1, 1)      SMEM scalar bias
    o_ref: (TILE_B, 1) VMEM output tile
    """
    x = x_ref[...]                      # (TILE_B, D) f32
    w_row = w_ref[...]                  # (1, D)      f32 (broadcast over rows)
    b = b_ref[0, 0]                     # scalar via the SMEM/sreg path
    # GEMV with a single output column: VPU multiply + XLU lane reduction.
    # Avoids the MXU (which would run at ~1/256 utilization for N=1) and the
    # lane-wasteful (D, 1) layout; fully hidden under the HBM-bound DMA stream.
    y = jnp.sum(x * w_row, axis=-1, keepdims=True) + b
    o_ref[...] = y.astype(o_ref.dtype)


def _choose_tile_b(B, D):
    # Size the batch tile so X's double buffer (2 * TILE_B * D * 4 bytes) stays
    # ~<= 12 MiB: safe under v7x's 32 MiB scoped / 64 MiB physical VMEM and
    # trivially under v5e/v6e, while being large enough to amortize the
    # ~0.35 us per-grid-step overhead (>= several hundred rows for moderate D).
    budget_per_buffer = 6 * 1024 * 1024
    rows = budget_per_buffer // (D * 4)
    rows = max(8, min(4096, (rows // 8) * 8))
    if B <= rows:
        return B                        # single full block is always legal
    return rows                         # multiple of 8 -> legal sublane tiling


def linreg_forward(x, w, b, tile_b=None):
    """x: (B, D) f32, w: (D, 1) f32, b: (1,) f32 -> (B, 1) f32."""
    B, D = x.shape
    if tile_b is None:
        tile_b = _choose_tile_b(B, D)

    w_row = w.reshape(1, D)             # lane-dense weight row
    b2d = b.reshape(1, 1)               # scalar bias, lives in SMEM

    return pl.pallas_call(
        _linreg_kernel,
        out_shape=jax.ShapeDtypeStruct((B, 1), jnp.float32),
        grid=(pl.cdiv(B, tile_b),),
        in_specs=[
            # X: streamed per batch tile (auto double-buffered by Pallas).
            pl.BlockSpec((tile_b, D), lambda i: (i, 0)),
            # w: same block every step -> stays resident in VMEM.
            pl.BlockSpec((1, D), lambda i: (0, 0)),
            # bias: single scalar in SMEM (no per-tile VMEM DMA / vreg).
            pl.BlockSpec(memory_space=pltpu.MemorySpace.SMEM),
        ],
        out_specs=pl.BlockSpec((tile_b, 1), lambda i: (i, 0)),
        compiler_params=pltpu.CompilerParams(
            # Batch tiles are independent -> shardable across TensorCores.
            dimension_semantics=("parallel",),
            vmem_limit_bytes=32 * 1024 * 1024,
        ),
    )(x, w_row, b2d)


class LinearRegressionScratch:
    """JAX mirror of the PyTorch module; forward runs the Pallas kernel."""

    def __init__(self, num_inputs, lr, sigma=0.01, key=None):
        self.lr = lr
        if key is None:
            key = jax.random.PRNGKey(0)
        # w ~ N(0, sigma), b = 0 (matches torch.normal / torch.zeros init).
        self.w = sigma * jax.random.normal(key, (num_inputs, 1), dtype=jnp.float32)
        self.b = jnp.zeros((1,), dtype=jnp.float32)

    def __call__(self, X):
        return linreg_forward(X, self.w, self.b)

    def loss(self, yhat, y):
        return jnp.mean((yhat - y) ** 2 / 2)

    # TODO(synk): SGD optimizer / training_step (autograd-driven) are host-side
    # training logic, not part of the forward kernel; not implemented here.


if __name__ == "__main__":
    key = jax.random.PRNGKey(0)
    k_x, k_w = jax.random.split(key, 2)

    batch, num_inputs = 1024, 32
    X = jax.random.normal(k_x, (batch, num_inputs), dtype=jnp.float32)

    model = LinearRegressionScratch(num_inputs=num_inputs, lr=0.03, key=k_w)
    ref = X @ model.w + model.b

    # 1) Default tile selection (single block here since B is small).
    yhat = jax.block_until_ready(model(X))
    assert yhat.shape == (batch, 1)
    assert jnp.allclose(yhat, ref, atol=1e-5, rtol=1e-5)

    # 2) Explicit multi-tile grid (4 batch tiles) to exercise the pipeline.
    yhat_tiled = jax.block_until_ready(
        linreg_forward(X, model.w, model.b, tile_b=256)
    )
    assert jnp.allclose(yhat_tiled, ref, atol=1e-5, rtol=1e-5)

    print("KERNEL_OK")
</pallas_src>

<mosaic_0001>
module attributes {stable_mosaic.version = 11 : i64} {
  func.func @_linreg_kernel(%arg0: i32, %arg1: memref<1024x32xf32, #tpu.memory_space<vmem>>, %arg2: memref<1x32xf32, #tpu.memory_space<vmem>>, %arg3: memref<1x1xf32, #tpu.memory_space<smem>>, %arg4: memref<1024x1xf32, #tpu.memory_space<vmem>>) attributes {dimension_semantics = [#tpu.dimension_semantics<parallel>], iteration_bounds = array<i64: 1>, scalar_prefetch = 0 : i64, scratch_operands = 0 : i64, tpu.core_type = #tpu.core_type<tc>, window_params = [{transform_indices = @transform_0, window_bounds = array<i64: 1024, 32>}, {pipeline_mode = #tpu.pipeline_mode<synchronous>, transform_indices = @transform_1, window_bounds = array<i64: 1, 32>}, {transform_indices = @transform_2, window_bounds = array<i64: 1, 1>}, {transform_indices = @transform_3, window_bounds = array<i64: 1024, 1>}]} {
    %c0 = arith.constant 0 : index
    %c0_0 = arith.constant 0 : index
    %0 = vector.load %arg1[%c0, %c0_0] : memref<1024x32xf32, #tpu.memory_space<vmem>>, vector<1024x32xf32>
    %c0_1 = arith.constant 0 : index
    %c0_2 = arith.constant 0 : index
    %1 = vector.load %arg2[%c0_1, %c0_2] : memref<1x32xf32, #tpu.memory_space<vmem>>, vector<1x32xf32>
    %c0_3 = arith.constant 0 : index
    %c0_4 = arith.constant 0 : index
    %2 = memref.load %arg3[%c0_3, %c0_4] : memref<1x1xf32, #tpu.memory_space<smem>>
    %3 = vector.broadcast %1 : vector<1x32xf32> to vector<1024x32xf32>
    %4 = arith.mulf %0, %3 : vector<1024x32xf32>
    %cst = arith.constant dense<0.000000e+00> : vector<1024xf32>
    %5 = vector.multi_reduction <add>, %4, %cst [1] : vector<1024x32xf32> to vector<1024xf32>
    %6 = vector.shape_cast %5 : vector<1024xf32> to vector<1024x1xf32>
    %7 = vector.broadcast %2 : f32 to vector<1024x1xf32>
    %8 = arith.addf %6, %7 : vector<1024x1xf32>
    %c0_5 = arith.constant 0 : index
    %c0_6 = arith.constant 0 : index
    %9 = vector.load %arg4[%c0_5, %c0_6] : memref<1024x1xf32, #tpu.memory_space<vmem>>, vector<1024x1xf32>
    tpu.vector_store %arg4[%c0_5, %c0_6], %8 {strides = array<i32>} : memref<1024x1xf32, #tpu.memory_space<vmem>>, vector<1024x1xf32>,
    return
  }
  func.func @transform_0(%arg0: i32) -> (i32, i32) {
    %c0_i32 = arith.constant 0 : i32
    %c0_i32_0 = arith.constant 0 : i32
    return %arg0, %c0_i32 : i32, i32
  }
  func.func @transform_1(%arg0: i32) -> (i32, i32) {
    %c0_i32 = arith.constant 0 : i32
    %c0_i32_0 = arith.constant 0 : i32
    %c0_i32_1 = arith.constant 0 : i32
    return %c0_i32, %c0_i32_0 : i32, i32
  }
  func.func @transform_2(%arg0: i32) -> (i32, i32) {
    %c0_i32 = arith.constant 0 : i32
    %c0_i32_0 = arith.constant 0 : i32
    %c0_i32_1 = arith.constant 0 : i32
    return %c0_i32, %c0_i32_0 : i32, i32
  }
  func.func @transform_3(%arg0: i32) -> (i32, i32) {
    %c0_i32 = arith.constant 0 : i32
    %c0_i32_0 = arith.constant 0 : i32
    return %arg0, %c0_i32 : i32, i32
  }
}

</mosaic_0001>

<bundles_post_ra>
// kernel: tpu_custom_call.1
= control target key start
LH: loop header
LB: loop body
LE: loop exit
PB: predicated region body
PF: predicated region fallthrough
CT: control target
= control target key end

     0   :  { %vm279_vm0 = vcmask 261120   ;;  %vm793_vm1 = vcmask 7168   ;;  %s2243_s0 = inlined_call_operand.vmem [shape: f32[1024,32], index: 0, kind: input, shape index: {}]   ;;  %s2244_s1 = inlined_call_operand.vmem [shape: f32[1,32], index: 1, kind: input, shape index: {}]   ;;  %s2245_s2 = inlined_call_operand.<no memory space> [shape: f32[1,1], index: 2, kind: input, shape index: {}]   ;;  %s2246_s3 = inlined_call_operand.vmem [shape: f32[1024,1], index: 3, kind: output, shape index: {}]  }
   0x1   :  { %v17_v0 = vld [vmem:[%s2243_s0 + $0x10] sm:$0xff]  ;;  %v954_v1 = vld [vmem:[%s2244_s1] ss:$0 sm:$0xff]  ;;  %v18_v5 = vld [vmem:[%s2243_s0 + $0x18] sm:$0xff] }
   0x2   :  { %v15_v2 = vld [vmem:[%s2243_s0] sm:$0xff]  ;;  %v153_v3 = vmul.f32 %v954_v1, %v17_v0  ;;  %v16_v6 = vld [vmem:[%s2243_s0 + $0x8] sm:$0xff]  ;;  %v154_v7 = vmul.f32 %v954_v1, %v18_v5  ;;  %v22_v17 = vld [vmem:[%s2243_s0 + $0x38] sm:$0xff] }
   0x3   :  { %v151_v4 = vmul.f32 %v954_v1, %v15_v2  ;;  %v152_v8 = vmul.f32 %v954_v1, %v16_v6  ;;  %v20_v9 = vld [vmem:[%s2243_s0 + $0x28] sm:$0xff]  ;;  %v19_v10 = vld [vmem:[%s2243_s0 + $0x20] sm:$0xff]  ;;  %v21_v18 = vld [vmem:[%s2243_s0 + $0x30] sm:$0xff]  ;;  %v158_v21 = vmul.f32 %v954_v1, %v22_v17 }
   0x4   :  { %v286_v11 = vsel %vm279_vm0, %v153_v3, 0.0  ;;  %v289_v13 = vsel %vm279_vm0, %v154_v7, 0.0  ;;  %v156_v15 = vmul.f32 %v954_v1, %v20_v9  ;;  %v155_v16 = vmul.f32 %v954_v1, %v19_v10  ;;  %v24_v23 = vld [vmem:[%s2243_s0 + $0x48] sm:$0xff]  ;;  %v23_v24 = vld [vmem:[%s2243_s0 + $0x40] sm:$0xff]  ;;  %v26_v29 = vld [vmem:[%s2243_s0 + $0x58] sm:$0xff] }
   0x5   :  { %v280_v12 = vsel %vm279_vm0, %v151_v4, 0.0  ;;  %287 = vadd.xlane.f32.xlu1 %v286_v11  ;;  %v283_v14 = vsel %vm279_vm0, %v152_v8, 0.0  ;;  %v157_v22 = vmul.f32 %v954_v1, %v21_v18  ;;  %v301_v25 = vsel %vm279_vm0, %v158_v21, 0.0  ;;  %v25_v30 = vld [vmem:[%s2243_s0 + $0x50] sm:$0xff]  ;;  %v28_v35 = vld [vmem:[%s2243_s0 + $0x68] sm:$0xff]  ;;  %v27_v36 = vld [vmem:[%s2243_s0 + $0x60] sm:$0xff] }
   0x6   :  { %281 = vadd.xlane.f32.xlu0 %v280_v12  ;;  %v295_v19 = vsel %vm279_vm0, %v156_v15, 0.0  ;;  %v292_v20 = vsel %vm279_vm0, %v155_v16, 0.0  ;;  %v160_v27 = vmul.f32 %v954_v1, %v24_v23  ;;  %v159_v28 = vmul.f32 %v954_v1, %v23_v24  ;;  %v30_v41 = vld [vmem:[%s2243_s0 + $0x78] sm:$0xff]  ;;  %v29_v42 = vld [vmem:[%s2243_s0 + $0x70] sm:$0xff]  ;;  %v32_v47 = vld [vmem:[%s2243_s0 + $0x88] sm:$0xff] }
   0x7   :  { %v298_v26 = vsel %vm279_vm0, %v157_v22, 0.0  ;;  %v162_v33 = vmul.f32 %v954_v1, %v26_v29  ;;  %v161_v34 = vmul.f32 %v954_v1, %v25_v30  ;;  %v164_v39 = vmul.f32 %v954_v1, %v28_v35  ;;  %v31_v48 = vld [vmem:[%s2243_s0 + $0x80] sm:$0xff]  ;;  %v34_v53 = vld [vmem:[%s2243_s0 + $0x98] sm:$0xff]  ;;  %v33_v54 = vld [vmem:[%s2243_s0 + $0x90] sm:$0xff] }
   0x8   :  { %v307_v31 = vsel %vm279_vm0, %v160_v27, 0.0  ;;  %v304_v32 = vsel %vm279_vm0, %v159_v28, 0.0  ;;  %v163_v40 = vmul.f32 %v954_v1, %v27_v36  ;;  %v166_v45 = vmul.f32 %v954_v1, %v30_v41  ;;  %v36_v59 = vld [vmem:[%s2243_s0 + $0xa8] sm:$0xff]  ;;  %v35_v60 = vld [vmem:[%s2243_s0 + $0xa0] sm:$0xff]  ;;  %v38_v2 = vld [vmem:[%s2243_s0 + $0xb8] sm:$0xff] }
   0x9   :  { %290 = vadd.xlane.f32.xlu1 %v289_v13  ;;  %v313_v37 = vsel %vm279_vm0, %v162_v33, 0.0  ;;  %v310_v38 = vsel %vm279_vm0, %v161_v34, 0.0  ;;  %v319_v43 = vsel %vm279_vm0, %v164_v39, 0.0  ;;  %v165_v46 = vmul.f32 %v954_v1, %v29_v42  ;;  %v37_v3 = vld [vmem:[%s2243_s0 + $0xb0] sm:$0xff]  ;;  %v40_v8 = vld [vmem:[%s2243_s0 + $0xc8] sm:$0xff]  ;;  %v39_v9 = vld [vmem:[%s2243_s0 + $0xc0] sm:$0xff] }
   0xa   :  { %284 = vadd.xlane.f32.xlu0 %v283_v14  ;;  %v316_v44 = vsel %vm279_vm0, %v163_v40, 0.0  ;;  %v325_v49 = vsel %vm279_vm0, %v166_v45, 0.0  ;;  %v168_v51 = vmul.f32 %v954_v1, %v32_v47  ;;  %v167_v52 = vmul.f32 %v954_v1, %v31_v48  ;;  %v42_v14 = vld [vmem:[%s2243_s0 + $0xd8] sm:$0xff]  ;;  %v41_v15 = vld [vmem:[%s2243_s0 + $0xd0] sm:$0xff]  ;;  %v43_v21 = vld [vmem:[%s2243_s0 + $0xe0] sm:$0xff] }
   0xb   :  { %v322_v50 = vsel %vm279_vm0, %v165_v46, 0.0  ;;  %v170_v57 = vmul.f32 %v954_v1, %v34_v53  ;;  %v169_v58 = vmul.f32 %v954_v1, %v33_v54  ;;  %v172_v63 = vmul.f32 %v954_v1, %v36_v59  ;;  %v45_v27 = vld [vmem:[%s2243_s0 + $0xf0] sm:$0xff]  ;;  %v47_v33 = vld [vmem:[%s2243_s0 + $0x100] sm:$0xff] }
   0xc   :  { %v331_v55 = vsel %vm279_vm0, %v168_v51, 0.0  ;;  %v328_v56 = vsel %vm279_vm0, %v167_v52, 0.0  ;;  %v171_v0 = vmul.f32 %v954_v1, %v35_v60  ;;  %v174_v6 = vmul.f32 %v954_v1, %v38_v2  ;;  %v49_v39 = vld [vmem:[%s2243_s0 + $0x110] sm:$0xff]  ;;  %v51_v45 = vld [vmem:[%s2243_s0 + $0x120] sm:$0xff] }
   0xd   :  { %296 = vadd.xlane.f32.xlu1 %v295_v19  ;;  %v337_v61 = vsel %vm279_vm0, %v170_v57, 0.0  ;;  %v334_v62 = vsel %vm279_vm0, %v169_v58, 0.0  ;;  %v343_v4 = vsel %vm279_vm0, %v172_v63, 0.0  ;;  %v173_v7 = vmul.f32 %v954_v1, %v37_v3  ;;  %v53_v51 = vld [vmem:[%s2243_s0 + $0x130] sm:$0xff]  ;;  %v55_v57 = vld [vmem:[%s2243_s0 + $0x140] sm:$0xff] }
   0xe   :  { %293 = vadd.xlane.f32.xlu0 %v292_v20  ;;  %v340_v5 = vsel %vm279_vm0, %v171_v0, 0.0  ;;  %v349_v10 = vsel %vm279_vm0, %v174_v6, 0.0  ;;  %v176_v12 = vmul.f32 %v954_v1, %v40_v8  ;;  %v175_v13 = vmul.f32 %v954_v1, %v39_v9  ;;  %v44_v20 = vld [vmem:[%s2243_s0 + $0xe8] sm:$0xff]  ;;  %v57_v63 = vld [vmem:[%s2243_s0 + $0x150] sm:$0xff]  ;;  %v59_v6 = vld [vmem:[%s2243_s0 + $0x160] sm:$0xff] }
   0xf   :  { %v346_v11 = vsel %vm279_vm0, %v173_v7, 0.0  ;;  %v178_v18 = vmul.f32 %v954_v1, %v42_v14  ;;  %v177_v19 = vmul.f32 %v954_v1, %v41_v15  ;;  %v180_v24 = vmul.f32 %v954_v1, %v44_v20 }
  0x10   :  { %v355_v16 = vsel %vm279_vm0, %v176_v12, 0.0  ;;  %v352_v17 = vsel %vm279_vm0, %v175_v13, 0.0  ;;  %v61_v12 = vld [vmem:[%s2243_s0 + $0x170] sm:$0xff] }
  0x11   :  { %302 = vadd.xlane.f32.xlu1 %v301_v25  ;;  %v361_v22 = vsel %vm279_vm0, %v178_v18, 0.0  ;;  %v358_v23 = vsel %vm279_vm0, %v177_v19, 0.0  ;;  %v179_v25 = vmul.f32 %v954_v1, %v43_v21  ;;  %v367_v28 = vsel %vm279_vm0, %v180_v24, 0.0  ;;  %v63_v18 = vld [vmem:[%s2243_s0 + $0x180] sm:$0xff]  ;;  %v65_v24 = vld [vmem:[%s2243_s0 + $0x190] sm:$0xff] }
  0x12   :  { %299 = vadd.xlane.f32.xlu0 %v298_v26  ;;  %v46_v26 = vld [vmem:[%s2243_s0 + $0xf8] sm:$0xff] }
  0x13   :  { %v364_v29 = vsel %vm279_vm0, %v179_v25, 0.0  ;;  %v182_v30 = vmul.f32 %v954_v1, %v46_v26 }
  0x15   :  { %308 = vadd.xlane.f32.xlu1 %v307_v31  ;;  %v181_v31 = vmul.f32 %v954_v1, %v45_v27  ;;  %v373_v34 = vsel %vm279_vm0, %v182_v30, 0.0  ;;  %v67_v30 = vld [vmem:[%s2243_s0 + $0x1a0] sm:$0xff] }
  0x16   :  { %305 = vadd.xlane.f32.xlu0 %v304_v32  ;;  %v48_v32 = vld [vmem:[%s2243_s0 + $0x108] sm:$0xff] }
  0x17   :  { %v370_v35 = vsel %vm279_vm0, %v181_v31, 0.0  ;;  %v184_v36 = vmul.f32 %v954_v1, %v48_v32 }
  0x19   :  { %314 = vadd.xlane.f32.xlu1 %v313_v37  ;;  %v183_v37 = vmul.f32 %v954_v1, %v47_v33  ;;  %v379_v40 = vsel %vm279_vm0, %v184_v36, 0.0  ;;  %v69_v36 = vld [vmem:[%s2243_s0 + $0x1b0] sm:$0xff] }
  0x1a   :  { %311 = vadd.xlane.f32.xlu0 %v310_v38  ;;  %v50_v38 = vld [vmem:[%s2243_s0 + $0x118] sm:$0xff] }
  0x1b   :  { %v376_v41 = vsel %vm279_vm0, %v183_v37, 0.0  ;;  %v186_v42 = vmul.f32 %v954_v1, %v50_v38 }
  0x1d   :  { %320 = vadd.xlane.f32.xlu1 %v319_v43  ;;  %v185_v43 = vmul.f32 %v954_v1, %v49_v39  ;;  %v385_v46 = vsel %vm279_vm0, %v186_v42, 0.0  ;;  %v71_v42 = vld [vmem:[%s2243_s0 + $0x1c0] sm:$0xff] }
  0x1e   :  { %317 = vadd.xlane.f32.xlu0 %v316_v44  ;;  %v52_v44 = vld [vmem:[%s2243_s0 + $0x128] sm:$0xff] }
  0x1f   :  { %v382_v47 = vsel %vm279_vm0, %v185_v43, 0.0  ;;  %v188_v48 = vmul.f32 %v954_v1, %v52_v44 }
  0x21   :  { %326 = vadd.xlane.f32.xlu1 %v325_v49  ;;  %v187_v49 = vmul.f32 %v954_v1, %v51_v45  ;;  %v391_v52 = vsel %vm279_vm0, %v188_v48, 0.0  ;;  %v73_v48 = vld [vmem:[%s2243_s0 + $0x1d0] sm:$0xff] }
  0x22   :  { %323 = vadd.xlane.f32.xlu0 %v322_v50  ;;  %v54_v50 = vld [vmem:[%s2243_s0 + $0x138] sm:$0xff] }
  0x23   :  { %v388_v53 = vsel %vm279_vm0, %v187_v49, 0.0  ;;  %v190_v54 = vmul.f32 %v954_v1, %v54_v50 }
  0x25   :  { %332 = vadd.xlane.f32.xlu1 %v331_v55  ;;  %v189_v55 = vmul.f32 %v954_v1, %v53_v51  ;;  %v397_v58 = vsel %vm279_vm0, %v190_v54, 0.0  ;;  %v75_v54 = vld [vmem:[%s2243_s0 + $0x1e0] sm:$0xff] }
  0x26   :  { %329 = vadd.xlane.f32.xlu0 %v328_v56  ;;  %v56_v56 = vld [vmem:[%s2243_s0 + $0x148] sm:$0xff] }
  0x27   :  { %v394_v59 = vsel %vm279_vm0, %v189_v55, 0.0  ;;  %v192_v60 = vmul.f32 %v954_v1, %v56_v56 }
  0x29   :  { %338 = vadd.xlane.f32.xlu1 %v337_v61  ;;  %v191_v61 = vmul.f32 %v954_v1, %v55_v57  ;;  %v403_v0 = vsel %vm279_vm0, %v192_v60, 0.0  ;;  %v77_v60 = vld [vmem:[%s2243_s0 + $0x1f0] sm:$0xff] }
  0x2a   :  { %335 = vadd.xlane.f32.xlu0 %v334_v62  ;;  %v58_v62 = vld [vmem:[%s2243_s0 + $0x158] sm:$0xff] }
  0x2b   :  { %v400_v2 = vsel %vm279_vm0, %v191_v61, 0.0  ;;  %v194_v3 = vmul.f32 %v954_v1, %v58_v62 }
  0x2d   :  { %344 = vadd.xlane.f32.xlu1 %v343_v4  ;;  %v193_v4 = vmul.f32 %v954_v1, %v57_v63  ;;  %v409_v7 = vsel %vm279_vm0, %v194_v3, 0.0  ;;  %v79_v3 = vld [vmem:[%s2243_s0 + $0x200] sm:$0xff] }
  0x2e   :  { %341 = vadd.xlane.f32.xlu0 %v340_v5  ;;  %v60_v5 = vld [vmem:[%s2243_s0 + $0x168] sm:$0xff] }
  0x2f   :  { %v406_v8 = vsel %vm279_vm0, %v193_v4, 0.0  ;;  %v196_v9 = vmul.f32 %v954_v1, %v60_v5 }
  0x31   :  { %350 = vadd.xlane.f32.xlu1 %v349_v10  ;;  %v195_v10 = vmul.f32 %v954_v1, %v59_v6  ;;  %v415_v13 = vsel %vm279_vm0, %v196_v9, 0.0  ;;  %v81_v9 = vld [vmem:[%s2243_s0 + $0x210] sm:$0xff] }
  0x32   :  { %347 = vadd.xlane.f32.xlu0 %v346_v11  ;;  %v62_v11 = vld [vmem:[%s2243_s0 + $0x178] sm:$0xff] }
  0x33   :  { %v412_v14 = vsel %vm279_vm0, %v195_v10, 0.0  ;;  %v198_v15 = vmul.f32 %v954_v1, %v62_v11 }
  0x35   :  { %356 = vadd.xlane.f32.xlu1 %v355_v16  ;;  %v197_v16 = vmul.f32 %v954_v1, %v61_v12  ;;  %v421_v19 = vsel %vm279_vm0, %v198_v15, 0.0  ;;  %v83_v15 = vld [vmem:[%s2243_s0 + $0x220] sm:$0xff] }
  0x36   :  { %353 = vadd.xlane.f32.xlu0 %v352_v17  ;;  %v64_v17 = vld [vmem:[%s2243_s0 + $0x188] sm:$0xff] }
  0x37   :  { %v418_v20 = vsel %vm279_vm0, %v197_v16, 0.0  ;;  %v200_v21 = vmul.f32 %v954_v1, %v64_v17 }
  0x39   :  { %362 = vadd.xlane.f32.xlu1 %v361_v22  ;;  %v199_v22 = vmul.f32 %v954_v1, %v63_v18  ;;  %v427_v25 = vsel %vm279_vm0, %v200_v21, 0.0  ;;  %v85_v21 = vld [vmem:[%s2243_s0 + $0x230] sm:$0xff] }
  0x3a   :  { %359 = vadd.xlane.f32.xlu0 %v358_v23  ;;  %v66_v23 = vld [vmem:[%s2243_s0 + $0x198] sm:$0xff] }
  0x3b   :  { %v424_v26 = vsel %vm279_vm0, %v199_v22, 0.0  ;;  %v202_v27 = vmul.f32 %v954_v1, %v66_v23 }
  0x3d   :  { %368 = vadd.xlane.f32.xlu1 %v367_v28  ;;  %v201_v28 = vmul.f32 %v954_v1, %v65_v24  ;;  %v433_v31 = vsel %vm279_vm0, %v202_v27, 0.0  ;;  %v87_v27 = vld [vmem:[%s2243_s0 + $0x240] sm:$0xff] }
  0x3e   :  { %365 = vadd.xlane.f32.xlu0 %v364_v29  ;;  %v68_v29 = vld [vmem:[%s2243_s0 + $0x1a8] sm:$0xff] }
  0x3f   :  { %v430_v32 = vsel %vm279_vm0, %v201_v28, 0.0  ;;  %v204_v33 = vmul.f32 %v954_v1, %v68_v29 }
  0x41   :  { %374 = vadd.xlane.f32.xlu1 %v373_v34  ;;  %v203_v34 = vmul.f32 %v954_v1, %v67_v30  ;;  %v439_v37 = vsel %vm279_vm0, %v204_v33, 0.0  ;;  %v89_v33 = vld [vmem:[%s2243_s0 + $0x250] sm:$0xff] }
  0x42   :  { %371 = vadd.xlane.f32.xlu0 %v370_v35  ;;  %v70_v35 = vld [vmem:[%s2243_s0 + $0x1b8] sm:$0xff] }
  0x43   :  { %v436_v38 = vsel %vm279_vm0, %v203_v34, 0.0  ;;  %v206_v39 = vmul.f32 %v954_v1, %v70_v35  ;;  %v1330_v34 = vstv %s2245_s2 }
  0x45   :  { %380 = vadd.xlane.f32.xlu1 %v379_v40  ;;  %v205_v40 = vmul.f32 %v954_v1, %v69_v36  ;;  %v445_v43 = vsel %vm279_vm0, %v206_v39, 0.0 }
  0x46   :  { %377 = vadd.xlane.f32.xlu0 %v376_v41  ;;  %v72_v41 = vld [vmem:[%s2243_s0 + $0x1c8] sm:$0xff] }
  0x47   :  { %v442_v44 = vsel %vm279_vm0, %v205_v40, 0.0  ;;  %v208_v45 = vmul.f32 %v954_v1, %v72_v41  ;;  %v225_v40 = vmul.f32 %v954_v1, %v89_v33 }
  0x49   :  { %386 = vadd.xlane.f32.xlu1 %v385_v46  ;;  %v207_v46 = vmul.f32 %v954_v1, %v71_v42  ;;  %v451_v49 = vsel %vm279_vm0, %v208_v45, 0.0 }
  0x4a   :  { %383 = vadd.xlane.f32.xlu0 %v382_v47  ;;  %v74_v47 = vld [vmem:[%s2243_s0 + $0x1d8] sm:$0xff] }
  0x4b   :  { %v448_v50 = vsel %vm279_vm0, %v207_v46, 0.0  ;;  %v210_v51 = vmul.f32 %v954_v1, %v74_v47 }
  0x4d   :  { %392 = vadd.xlane.f32.xlu1 %v391_v52  ;;  %v209_v52 = vmul.f32 %v954_v1, %v73_v48  ;;  %v457_v55 = vsel %vm279_vm0, %v210_v51, 0.0  ;;  %v502_v48 = vsel %vm279_vm0, %v225_v40, 0.0 }
  0x4e   :  { %389 = vadd.xlane.f32.xlu0 %v388_v53  ;;  %v76_v53 = vld [vmem:[%s2243_s0 + $0x1e8] sm:$0xff] }
  0x4f   :  { %v454_v56 = vsel %vm279_vm0, %v209_v52, 0.0  ;;  %v212_v57 = vmul.f32 %v954_v1, %v76_v53  ;;  %v94_v53 = vld [vmem:[%s2243_s0 + $0x278] sm:$0xff] }
  0x51   :  { %398 = vadd.xlane.f32.xlu1 %v397_v58  ;;  %v211_v58 = vmul.f32 %v954_v1, %v75_v54  ;;  %v463_v61 = vsel %vm279_vm0, %v212_v57, 0.0  ;;  %v93_v54 = vld [vmem:[%s2243_s0 + $0x270] sm:$0xff] }
  0x52   :  { %395 = vadd.xlane.f32.xlu0 %v394_v59  ;;  %v78_v59 = vld [vmem:[%s2243_s0 + $0x1f8] sm:$0xff] }
  0x53   :  { %v460_v62 = vsel %vm279_vm0, %v211_v58, 0.0  ;;  %v214_v63 = vmul.f32 %v954_v1, %v78_v59  ;;  %v230_v59 = vmul.f32 %v954_v1, %v94_v53 }
  0x55   :  { %404 = vadd.xlane.f32.xlu1 %v403_v0  ;;  %v213_v0 = vmul.f32 %v954_v1, %v77_v60  ;;  %v469_v4 = vsel %vm279_vm0, %v214_v63, 0.0  ;;  %v229_v60 = vmul.f32 %v954_v1, %v93_v54  ;;  %v96_v63 = vld [vmem:[%s2243_s0 + $0x288] sm:$0xff] }
  0x56   :  { %401 = vadd.xlane.f32.xlu0 %v400_v2  ;;  %v80_v2 = vld [vmem:[%s2243_s0 + $0x208] sm:$0xff] }
  0x57   :  { %v466_v5 = vsel %vm279_vm0, %v213_v0, 0.0  ;;  %v216_v6 = vmul.f32 %v954_v1, %v80_v2  ;;  %v95_v0 = vld [vmem:[%s2243_s0 + $0x280] sm:$0xff] }
  0x59   :  { %410 = vadd.xlane.f32.xlu1 %v409_v7  ;;  %v215_v7 = vmul.f32 %v954_v1, %v79_v3  ;;  %v475_v10 = vsel %vm279_vm0, %v216_v6, 0.0  ;;  %v232_v6 = vmul.f32 %v954_v1, %v96_v63 }
  0x5a   :  { %407 = vadd.xlane.f32.xlu0 %v406_v8  ;;  %v82_v8 = vld [vmem:[%s2243_s0 + $0x218] sm:$0xff] }
  0x5b   :  { %v472_v11 = vsel %vm279_vm0, %v215_v7, 0.0  ;;  %v218_v12 = vmul.f32 %v954_v1, %v82_v8  ;;  %v231_v7 = vmul.f32 %v954_v1, %v95_v0 }
  0x5d   :  { %416 = vadd.xlane.f32.xlu1 %v415_v13  ;;  %v217_v13 = vmul.f32 %v954_v1, %v81_v9  ;;  %v481_v16 = vsel %vm279_vm0, %v218_v12, 0.0 }
  0x5e   :  { %413 = vadd.xlane.f32.xlu0 %v412_v14  ;;  %v84_v14 = vld [vmem:[%s2243_s0 + $0x228] sm:$0xff] }
  0x5f   :  { %v478_v17 = vsel %vm279_vm0, %v217_v13, 0.0  ;;  %v220_v18 = vmul.f32 %v954_v1, %v84_v14  ;;  %v523_v14 = vsel %vm279_vm0, %v232_v6, 0.0 }
  0x61   :  { %422 = vadd.xlane.f32.xlu1 %v421_v19  ;;  %v219_v19 = vmul.f32 %v954_v1, %v83_v15  ;;  %v487_v22 = vsel %vm279_vm0, %v220_v18, 0.0  ;;  %v520_v15 = vsel %vm279_vm0, %v231_v7, 0.0 }
  0x62   :  { %419 = vadd.xlane.f32.xlu0 %v418_v20  ;;  %v86_v20 = vld [vmem:[%s2243_s0 + $0x238] sm:$0xff] }
  0x63   :  { %v484_v23 = vsel %vm279_vm0, %v219_v19, 0.0  ;;  %v222_v24 = vmul.f32 %v954_v1, %v86_v20  ;;  %v100_v20 = vld [vmem:[%s2243_s0 + $0x2a8] sm:$0xff] }
  0x65   :  { %428 = vadd.xlane.f32.xlu1 %v427_v25  ;;  %v221_v25 = vmul.f32 %v954_v1, %v85_v21  ;;  %v493_v28 = vsel %vm279_vm0, %v222_v24, 0.0  ;;  %v99_v21 = vld [vmem:[%s2243_s0 + $0x2a0] sm:$0xff] }
  0x66   :  { %425 = vadd.xlane.f32.xlu0 %v424_v26  ;;  %v88_v26 = vld [vmem:[%s2243_s0 + $0x248] sm:$0xff] }
  0x67   :  { %v490_v29 = vsel %vm279_vm0, %v221_v25, 0.0  ;;  %v224_v30 = vmul.f32 %v954_v1, %v88_v26  ;;  %v236_v26 = vmul.f32 %v954_v1, %v100_v20 }
  0x69   :  { %434 = vadd.xlane.f32.xlu1 %v433_v31  ;;  %v223_v31 = vmul.f32 %v954_v1, %v87_v27  ;;  %v235_v27 = vmul.f32 %v954_v1, %v99_v21 }
  0x6a   :  { %431 = vadd.xlane.f32.xlu0 %v430_v32  ;;  %v90_v32 = vld [vmem:[%s2243_s0 + $0x258] sm:$0xff] }
  0x6b   :  { %v226_v39 = vmul.f32 %v954_v1, %v90_v32 }
  0x6d   :  { %440 = vadd.xlane.f32.xlu1 %v439_v37  ;;  %v499_v37 = vsel %vm279_vm0, %v224_v30, 0.0  ;;  %v505_v47 = vsel %vm279_vm0, %v226_v39, 0.0  ;;  %v102_v30 = vld [vmem:[%s2243_s0 + $0x2b8] sm:$0xff] }
  0x6e   :  { %437 = vadd.xlane.f32.xlu0 %v436_v38  ;;  %v496_v38 = vsel %vm279_vm0, %v223_v31, 0.0  ;;  %v101_v31 = vld [vmem:[%s2243_s0 + $0x2b0] sm:$0xff] }
  0x71   :  { %446 = vadd.xlane.f32.xlu1 %v445_v43  ;;  %v92_v43 = vld [vmem:[%s2243_s0 + $0x268] sm:$0xff] }
  0x72   :  { %443 = vadd.xlane.f32.xlu0 %v442_v44  ;;  %v91_v44 = vld [vmem:[%s2243_s0 + $0x260] sm:$0xff] }
  0x75   :  { %452 = vadd.xlane.f32.xlu1 %v451_v49  ;;  %v228_v49 = vmul.f32 %v954_v1, %v92_v43 }
  0x76   :  { %449 = vadd.xlane.f32.xlu0 %v448_v50  ;;  %v227_v50 = vmul.f32 %v954_v1, %v91_v44 }
  0x77   :  { %v511_v57 = vsel %vm279_vm0, %v228_v49, 0.0 }
  0x78   :  { %v508_v58 = vsel %vm279_vm0, %v227_v50, 0.0 }
  0x79   :  { %458 = vadd.xlane.f32.xlu1 %v457_v55 }
  0x7a   :  { %455 = vadd.xlane.f32.xlu0 %v454_v56 }
  0x7d   :  { %464 = vadd.xlane.f32.xlu1 %v463_v61 }
  0x7e   :  { %461 = vadd.xlane.f32.xlu0 %v460_v62 }
  0x81   :  { %470 = vadd.xlane.f32.xlu1 %v469_v4  ;;  %v517_v4 = vsel %vm279_vm0, %v230_v59, 0.0 }
  0x82   :  { %467 = vadd.xlane.f32.xlu0 %v466_v5  ;;  %v514_v5 = vsel %vm279_vm0, %v229_v60, 0.0 }
  0x85   :  { %476 = vadd.xlane.f32.xlu1 %v475_v10  ;;  %v98_v10 = vld [vmem:[%s2243_s0 + $0x298] sm:$0xff] }
  0x86   :  { %473 = vadd.xlane.f32.xlu0 %v472_v11  ;;  %v97_v11 = vld [vmem:[%s2243_s0 + $0x290] sm:$0xff] }
  0x89   :  { %482 = vadd.xlane.f32.xlu1 %v481_v16  ;;  %v234_v16 = vmul.f32 %v954_v1, %v98_v10 }
  0x8a   :  { %479 = vadd.xlane.f32.xlu0 %v478_v17  ;;  %v233_v17 = vmul.f32 %v954_v1, %v97_v11 }
  0x8b   :  { %v529_v24 = vsel %vm279_vm0, %v234_v16, 0.0 }
  0x8c   :  { %v526_v25 = vsel %vm279_vm0, %v233_v17, 0.0 }
  0x8d   :  { %488 = vadd.xlane.f32.xlu1 %v487_v22 }
  0x8e   :  { %485 = vadd.xlane.f32.xlu0 %v484_v23 }
  0x91   :  { %494 = vadd.xlane.f32.xlu1 %v493_v28 }
  0x92   :  { %491 = vadd.xlane.f32.xlu0 %v490_v29  ;;  %v288_v35 = vpop.xlane.xlu1 %287 }
  0x93   :  { %v282_v36 = vpop.xlane.xlu0 %281  ;;  %v667_v41 = vadd.f32 %v1330_v34, %v288_v35  ;;  %v535_v35 = vsel %vm279_vm0, %v236_v26, 0.0 }
  0x94   :  { %v665_v42 = vadd.f32 %v1330_v34, %v282_v36  ;;  %v532_v36 = vsel %vm279_vm0, %v235_v27, 0.0 }
  0x95   :  { %796 = vst.msk [vmem:[%s2246_s3 + $0x10] sm:$0xff] %vm793_vm1, %v667_v41  ;;  %500 = vadd.xlane.f32.xlu1 %v499_v37  ;;  %v238_v37 = vmul.f32 %v954_v1, %v102_v30  ;;  %v104_v41 = vld [vmem:[%s2243_s0 + $0x2c8] sm:$0xff] }
  0x96   :  { %794 = vst.msk [vmem:[%s2246_s3] sm:$0xff] %vm793_vm1, %v665_v42  ;;  %497 = vadd.xlane.f32.xlu0 %v496_v38  ;;  %v291_v45 = vpop.xlane.xlu1 %290  ;;  %v237_v38 = vmul.f32 %v954_v1, %v101_v31  ;;  %v103_v42 = vld [vmem:[%s2243_s0 + $0x2c0] sm:$0xff] }
  0x97   :  { %v285_v46 = vpop.xlane.xlu0 %284  ;;  %v668_v51 = vadd.f32 %v1330_v34, %v291_v45  ;;  %v541_v45 = vsel %vm279_vm0, %v238_v37, 0.0 }
  0x98   :  { %v666_v52 = vadd.f32 %v1330_v34, %v285_v46  ;;  %v538_v46 = vsel %vm279_vm0, %v237_v38, 0.0 }
  0x99   :  { %797 = vst.msk [vmem:[%s2246_s3 + $0x18] sm:$0xff] %vm793_vm1, %v668_v51  ;;  %506 = vadd.xlane.f32.xlu1 %v505_v47  ;;  %v240_v47 = vmul.f32 %v954_v1, %v104_v41  ;;  %v106_v51 = vld [vmem:[%s2243_s0 + $0x2d8] sm:$0xff] }
  0x9a   :  { %795 = vst.msk [vmem:[%s2246_s3 + $0x8] sm:$0xff] %vm793_vm1, %v666_v52  ;;  %503 = vadd.xlane.f32.xlu0 %v502_v48  ;;  %v297_v55 = vpop.xlane.xlu1 %296  ;;  %v239_v48 = vmul.f32 %v954_v1, %v103_v42  ;;  %v105_v52 = vld [vmem:[%s2243_s0 + $0x2d0] sm:$0xff] }
  0x9b   :  { %v294_v56 = vpop.xlane.xlu0 %293  ;;  %v670_v61 = vadd.f32 %v1330_v34, %v297_v55  ;;  %v547_v55 = vsel %vm279_vm0, %v240_v47, 0.0 }
  0x9c   :  { %v669_v62 = vadd.f32 %v1330_v34, %v294_v56  ;;  %v544_v56 = vsel %vm279_vm0, %v239_v48, 0.0 }
  0x9d   :  { %799 = vst.msk [vmem:[%s2246_s3 + $0x28] sm:$0xff] %vm793_vm1, %v670_v61  ;;  %512 = vadd.xlane.f32.xlu1 %v511_v57  ;;  %v242_v57 = vmul.f32 %v954_v1, %v106_v51  ;;  %v108_v61 = vld [vmem:[%s2243_s0 + $0x2e8] sm:$0xff] }
  0x9e   :  { %798 = vst.msk [vmem:[%s2246_s3 + $0x20] sm:$0xff] %vm793_vm1, %v669_v62  ;;  %509 = vadd.xlane.f32.xlu0 %v508_v58  ;;  %v303_v2 = vpop.xlane.xlu1 %302  ;;  %v241_v58 = vmul.f32 %v954_v1, %v105_v52  ;;  %v107_v62 = vld [vmem:[%s2243_s0 + $0x2e0] sm:$0xff] }
  0x9f   :  { %v300_v3 = vpop.xlane.xlu0 %299  ;;  %v672_v8 = vadd.f32 %v1330_v34, %v303_v2  ;;  %v553_v2 = vsel %vm279_vm0, %v242_v57, 0.0 }
  0xa0   :  { %v671_v9 = vadd.f32 %v1330_v34, %v300_v3  ;;  %v550_v3 = vsel %vm279_vm0, %v241_v58, 0.0 }
  0xa1   :  { %801 = vst.msk [vmem:[%s2246_s3 + $0x38] sm:$0xff] %vm793_vm1, %v672_v8  ;;  %518 = vadd.xlane.f32.xlu1 %v517_v4  ;;  %v244_v4 = vmul.f32 %v954_v1, %v108_v61  ;;  %v110_v8 = vld [vmem:[%s2243_s0 + $0x2f8] sm:$0xff] }
  0xa2   :  { %800 = vst.msk [vmem:[%s2246_s3 + $0x30] sm:$0xff] %vm793_vm1, %v671_v9  ;;  %515 = vadd.xlane.f32.xlu0 %v514_v5  ;;  %v309_v12 = vpop.xlane.xlu1 %308  ;;  %v243_v5 = vmul.f32 %v954_v1, %v107_v62  ;;  %v109_v9 = vld [vmem:[%s2243_s0 + $0x2f0] sm:$0xff] }
  0xa3   :  { %v306_v13 = vpop.xlane.xlu0 %305  ;;  %v674_v18 = vadd.f32 %v1330_v34, %v309_v12  ;;  %v559_v12 = vsel %vm279_vm0, %v244_v4, 0.0 }
  0xa4   :  { %v673_v19 = vadd.f32 %v1330_v34, %v306_v13  ;;  %v556_v13 = vsel %vm279_vm0, %v243_v5, 0.0 }
  0xa5   :  { %803 = vst.msk [vmem:[%s2246_s3 + $0x48] sm:$0xff] %vm793_vm1, %v674_v18  ;;  %524 = vadd.xlane.f32.xlu1 %v523_v14  ;;  %v246_v14 = vmul.f32 %v954_v1, %v110_v8  ;;  %v112_v18 = vld [vmem:[%s2243_s0 + $0x308] sm:$0xff] }
  0xa6   :  { %802 = vst.msk [vmem:[%s2246_s3 + $0x40] sm:$0xff] %vm793_vm1, %v673_v19  ;;  %521 = vadd.xlane.f32.xlu0 %v520_v15  ;;  %v315_v22 = vpop.xlane.xlu1 %314  ;;  %v245_v15 = vmul.f32 %v954_v1, %v109_v9  ;;  %v111_v19 = vld [vmem:[%s2243_s0 + $0x300] sm:$0xff] }
  0xa7   :  { %v312_v23 = vpop.xlane.xlu0 %311  ;;  %v676_v28 = vadd.f32 %v1330_v34, %v315_v22  ;;  %v565_v22 = vsel %vm279_vm0, %v246_v14, 0.0 }
  0xa8   :  { %v675_v29 = vadd.f32 %v1330_v34, %v312_v23  ;;  %v562_v23 = vsel %vm279_vm0, %v245_v15, 0.0 }
  0xa9   :  { %805 = vst.msk [vmem:[%s2246_s3 + $0x58] sm:$0xff] %vm793_vm1, %v676_v28  ;;  %530 = vadd.xlane.f32.xlu1 %v529_v24  ;;  %v248_v24 = vmul.f32 %v954_v1, %v112_v18  ;;  %v114_v28 = vld [vmem:[%s2243_s0 + $0x318] sm:$0xff] }
  0xaa   :  { %804 = vst.msk [vmem:[%s2246_s3 + $0x50] sm:$0xff] %vm793_vm1, %v675_v29  ;;  %527 = vadd.xlane.f32.xlu0 %v526_v25  ;;  %v321_v32 = vpop.xlane.xlu1 %320  ;;  %v247_v25 = vmul.f32 %v954_v1, %v111_v19  ;;  %v113_v29 = vld [vmem:[%s2243_s0 + $0x310] sm:$0xff] }
  0xab   :  { %v318_v33 = vpop.xlane.xlu0 %317  ;;  %v678_v39 = vadd.f32 %v1330_v34, %v321_v32  ;;  %v571_v32 = vsel %vm279_vm0, %v248_v24, 0.0 }
  0xac   :  { %v677_v40 = vadd.f32 %v1330_v34, %v318_v33  ;;  %v568_v33 = vsel %vm279_vm0, %v247_v25, 0.0 }
  0xad   :  { %807 = vst.msk [vmem:[%s2246_s3 + $0x68] sm:$0xff] %vm793_vm1, %v678_v39  ;;  %536 = vadd.xlane.f32.xlu1 %v535_v35  ;;  %v250_v35 = vmul.f32 %v954_v1, %v114_v28  ;;  %v116_v39 = vld [vmem:[%s2243_s0 + $0x328] sm:$0xff] }
  0xae   :  { %806 = vst.msk [vmem:[%s2246_s3 + $0x60] sm:$0xff] %vm793_vm1, %v677_v40  ;;  %533 = vadd.xlane.f32.xlu0 %v532_v36  ;;  %v327_v43 = vpop.xlane.xlu1 %326  ;;  %v249_v36 = vmul.f32 %v954_v1, %v113_v29  ;;  %v115_v40 = vld [vmem:[%s2243_s0 + $0x320] sm:$0xff] }
  0xaf   :  { %v324_v44 = vpop.xlane.xlu0 %323  ;;  %v680_v49 = vadd.f32 %v1330_v34, %v327_v43  ;;  %v577_v43 = vsel %vm279_vm0, %v250_v35, 0.0 }
  0xb0   :  { %v679_v50 = vadd.f32 %v1330_v34, %v324_v44  ;;  %v574_v44 = vsel %vm279_vm0, %v249_v36, 0.0 }
  0xb1   :  { %809 = vst.msk [vmem:[%s2246_s3 + $0x78] sm:$0xff] %vm793_vm1, %v680_v49  ;;  %542 = vadd.xlane.f32.xlu1 %v541_v45  ;;  %v252_v45 = vmul.f32 %v954_v1, %v116_v39  ;;  %v118_v49 = vld [vmem:[%s2243_s0 + $0x338] sm:$0xff] }
  0xb2   :  { %808 = vst.msk [vmem:[%s2246_s3 + $0x70] sm:$0xff] %vm793_vm1, %v679_v50  ;;  %539 = vadd.xlane.f32.xlu0 %v538_v46  ;;  %v333_v53 = vpop.xlane.xlu1 %332  ;;  %v251_v46 = vmul.f32 %v954_v1, %v115_v40  ;;  %v117_v50 = vld [vmem:[%s2243_s0 + $0x330] sm:$0xff] }
  0xb3   :  { %v330_v54 = vpop.xlane.xlu0 %329  ;;  %v682_v59 = vadd.f32 %v1330_v34, %v333_v53  ;;  %v583_v53 = vsel %vm279_vm0, %v252_v45, 0.0 }
  0xb4   :  { %v681_v60 = vadd.f32 %v1330_v34, %v330_v54  ;;  %v580_v54 = vsel %vm279_vm0, %v251_v46, 0.0 }
  0xb5   :  { %811 = vst.msk [vmem:[%s2246_s3 + $0x88] sm:$0xff] %vm793_vm1, %v682_v59  ;;  %548 = vadd.xlane.f32.xlu1 %v547_v55  ;;  %v254_v55 = vmul.f32 %v954_v1, %v118_v49  ;;  %v120_v59 = vld [vmem:[%s2243_s0 + $0x348] sm:$0xff] }
  0xb6   :  { %810 = vst.msk [vmem:[%s2246_s3 + $0x80] sm:$0xff] %vm793_vm1, %v681_v60  ;;  %545 = vadd.xlane.f32.xlu0 %v544_v56  ;;  %v339_v63 = vpop.xlane.xlu1 %338  ;;  %v253_v56 = vmul.f32 %v954_v1, %v117_v50  ;;  %v119_v60 = vld [vmem:[%s2243_s0 + $0x340] sm:$0xff] }
  0xb7   :  { %v336_v0 = vpop.xlane.xlu0 %335  ;;  %v684_v6 = vadd.f32 %v1330_v34, %v339_v63  ;;  %v589_v62 = vsel %vm279_vm0, %v254_v55, 0.0 }
  0xb8   :  { %v683_v7 = vadd.f32 %v1330_v34, %v336_v0  ;;  %v586_v63 = vsel %vm279_vm0, %v253_v56, 0.0  ;;  %v1637_v0 = vld [vmem:[%s2244_s1] ss:$0 sm:$0xff] }
  0xb9   :  { %813 = vst.msk [vmem:[%s2246_s3 + $0x98] sm:$0xff] %vm793_vm1, %v684_v6  ;;  %554 = vadd.xlane.f32.xlu1 %v553_v2  ;;  %v256_v2 = vmul.f32 %v1637_v0, %v120_v59  ;;  %v122_v6 = vld [vmem:[%s2243_s0 + $0x358] sm:$0xff] }
  0xba   :  { %812 = vst.msk [vmem:[%s2246_s3 + $0x90] sm:$0xff] %vm793_vm1, %v683_v7  ;;  %551 = vadd.xlane.f32.xlu0 %v550_v3  ;;  %v345_v10 = vpop.xlane.xlu1 %344  ;;  %v255_v3 = vmul.f32 %v1637_v0, %v119_v60  ;;  %v121_v7 = vld [vmem:[%s2243_s0 + $0x350] sm:$0xff] }
  0xbb   :  { %v342_v11 = vpop.xlane.xlu0 %341  ;;  %v686_v16 = vadd.f32 %v1330_v34, %v345_v10  ;;  %v595_v10 = vsel %vm279_vm0, %v256_v2, 0.0 }
  0xbc   :  { %v685_v17 = vadd.f32 %v1330_v34, %v342_v11  ;;  %v592_v11 = vsel %vm279_vm0, %v255_v3, 0.0 }
  0xbd   :  { %815 = vst.msk [vmem:[%s2246_s3 + $0xa8] sm:$0xff] %vm793_vm1, %v686_v16  ;;  %560 = vadd.xlane.f32.xlu1 %v559_v12  ;;  %v258_v12 = vmul.f32 %v1637_v0, %v122_v6  ;;  %v124_v16 = vld [vmem:[%s2243_s0 + $0x368] sm:$0xff] }
  0xbe   :  { %814 = vst.msk [vmem:[%s2246_s3 + $0xa0] sm:$0xff] %vm793_vm1, %v685_v17  ;;  %557 = vadd.xlane.f32.xlu0 %v556_v13  ;;  %v351_v20 = vpop.xlane.xlu1 %350  ;;  %v257_v13 = vmul.f32 %v1637_v0, %v121_v7  ;;  %v123_v17 = vld [vmem:[%s2243_s0 + $0x360] sm:$0xff] }
  0xbf   :  { %v348_v21 = vpop.xlane.xlu0 %347  ;;  %v688_v26 = vadd.f32 %v1330_v34, %v351_v20  ;;  %v601_v20 = vsel %vm279_vm0, %v258_v12, 0.0 }
  0xc0   :  { %v687_v27 = vadd.f32 %v1330_v34, %v348_v21  ;;  %v598_v21 = vsel %vm279_vm0, %v257_v13, 0.0 }
  0xc1   :  { %817 = vst.msk [vmem:[%s2246_s3 + $0xb8] sm:$0xff] %vm793_vm1, %v688_v26  ;;  %566 = vadd.xlane.f32.xlu1 %v565_v22  ;;  %v260_v22 = vmul.f32 %v1637_v0, %v124_v16  ;;  %v126_v26 = vld [vmem:[%s2243_s0 + $0x378] sm:$0xff] }
  0xc2   :  { %816 = vst.msk [vmem:[%s2246_s3 + $0xb0] sm:$0xff] %vm793_vm1, %v687_v27  ;;  %563 = vadd.xlane.f32.xlu0 %v562_v23  ;;  %v357_v30 = vpop.xlane.xlu1 %356  ;;  %v259_v23 = vmul.f32 %v1637_v0, %v123_v17  ;;  %v125_v27 = vld [vmem:[%s2243_s0 + $0x370] sm:$0xff] }
  0xc3   :  { %v354_v31 = vpop.xlane.xlu0 %353  ;;  %v690_v37 = vadd.f32 %v1330_v34, %v357_v30  ;;  %v607_v30 = vsel %vm279_vm0, %v260_v22, 0.0 }
  0xc4   :  { %v689_v38 = vadd.f32 %v1330_v34, %v354_v31  ;;  %v604_v31 = vsel %vm279_vm0, %v259_v23, 0.0 }
  0xc5   :  { %819 = vst.msk [vmem:[%s2246_s3 + $0xc8] sm:$0xff] %vm793_vm1, %v690_v37  ;;  %572 = vadd.xlane.f32.xlu1 %v571_v32  ;;  %v262_v32 = vmul.f32 %v1637_v0, %v126_v26  ;;  %v128_v37 = vld [vmem:[%s2243_s0 + $0x388] sm:$0xff] }
  0xc6   :  { %818 = vst.msk [vmem:[%s2246_s3 + $0xc0] sm:$0xff] %vm793_vm1, %v689_v38  ;;  %569 = vadd.xlane.f32.xlu0 %v568_v33  ;;  %v363_v41 = vpop.xlane.xlu1 %362  ;;  %v261_v33 = vmul.f32 %v1637_v0, %v125_v27  ;;  %v127_v38 = vld [vmem:[%s2243_s0 + $0x380] sm:$0xff] }
  0xc7   :  { %v360_v42 = vpop.xlane.xlu0 %359  ;;  %v692_v47 = vadd.f32 %v1330_v34, %v363_v41  ;;  %v613_v41 = vsel %vm279_vm0, %v262_v32, 0.0 }
  0xc8   :  { %v691_v48 = vadd.f32 %v1330_v34, %v360_v42  ;;  %v610_v42 = vsel %vm279_vm0, %v261_v33, 0.0 }
  0xc9   :  { %821 = vst.msk [vmem:[%s2246_s3 + $0xd8] sm:$0xff] %vm793_vm1, %v692_v47  ;;  %578 = vadd.xlane.f32.xlu1 %v577_v43  ;;  %v264_v43 = vmul.f32 %v1637_v0, %v128_v37  ;;  %v130_v47 = vld [vmem:[%s2243_s0 + $0x398] sm:$0xff] }
  0xca   :  { %820 = vst.msk [vmem:[%s2246_s3 + $0xd0] sm:$0xff] %vm793_vm1, %v691_v48  ;;  %575 = vadd.xlane.f32.xlu0 %v574_v44  ;;  %v369_v51 = vpop.xlane.xlu1 %368  ;;  %v263_v44 = vmul.f32 %v1637_v0, %v127_v38  ;;  %v129_v48 = vld [vmem:[%s2243_s0 + $0x390] sm:$0xff] }
  0xcb   :  { %v366_v52 = vpop.xlane.xlu0 %365  ;;  %v694_v57 = vadd.f32 %v1330_v34, %v369_v51  ;;  %v619_v51 = vsel %vm279_vm0, %v264_v43, 0.0 }
  0xcc   :  { %v693_v58 = vadd.f32 %v1330_v34, %v366_v52  ;;  %v616_v52 = vsel %vm279_vm0, %v263_v44, 0.0 }
  0xcd   :  { %823 = vst.msk [vmem:[%s2246_s3 + $0xe8] sm:$0xff] %vm793_vm1, %v694_v57  ;;  %584 = vadd.xlane.f32.xlu1 %v583_v53  ;;  %v266_v53 = vmul.f32 %v1637_v0, %v130_v47  ;;  %v132_v57 = vld [vmem:[%s2243_s0 + $0x3a8] sm:$0xff] }
  0xce   :  { %822 = vst.msk [vmem:[%s2246_s3 + $0xe0] sm:$0xff] %vm793_vm1, %v693_v58  ;;  %581 = vadd.xlane.f32.xlu0 %v580_v54  ;;  %v375_v1 = vpop.xlane.xlu1 %374  ;;  %v265_v54 = vmul.f32 %v1637_v0, %v129_v48  ;;  %v131_v58 = vld [vmem:[%s2243_s0 + $0x3a0] sm:$0xff] }
  0xcf   :  { %v372_v61 = vpop.xlane.xlu0 %371  ;;  %v696_v4 = vadd.f32 %v1330_v34, %v375_v1  ;;  %v625_v1 = vsel %vm279_vm0, %v266_v53, 0.0 }
  0xd0   :  { %v695_v5 = vadd.f32 %v1330_v34, %v372_v61  ;;  %v622_v61 = vsel %vm279_vm0, %v265_v54, 0.0 }
  0xd1   :  { %825 = vst.msk [vmem:[%s2246_s3 + $0xf8] sm:$0xff] %vm793_vm1, %v696_v4  ;;  %590 = vadd.xlane.f32.xlu1 %v589_v62  ;;  %v268_v62 = vmul.f32 %v1637_v0, %v132_v57  ;;  %v134_v4 = vld [vmem:[%s2243_s0 + $0x3b8] sm:$0xff] }
  0xd2   :  { %824 = vst.msk [vmem:[%s2246_s3 + $0xf0] sm:$0xff] %vm793_vm1, %v695_v5  ;;  %587 = vadd.xlane.f32.xlu0 %v586_v63  ;;  %v381_v8 = vpop.xlane.xlu1 %380  ;;  %v267_v63 = vmul.f32 %v1637_v0, %v131_v58  ;;  %v133_v5 = vld [vmem:[%s2243_s0 + $0x3b0] sm:$0xff] }
  0xd3   :  { %v378_v9 = vpop.xlane.xlu0 %377  ;;  %v698_v14 = vadd.f32 %v1330_v34, %v381_v8  ;;  %v631_v8 = vsel %vm279_vm0, %v268_v62, 0.0 }
  0xd4   :  { %v697_v15 = vadd.f32 %v1330_v34, %v378_v9  ;;  %v628_v9 = vsel %vm279_vm0, %v267_v63, 0.0 }
  0xd5   :  { %827 = vst.msk [vmem:[%s2246_s3 + $0x108] sm:$0xff] %vm793_vm1, %v698_v14  ;;  %596 = vadd.xlane.f32.xlu1 %v595_v10  ;;  %v270_v10 = vmul.f32 %v1637_v0, %v134_v4  ;;  %v136_v14 = vld [vmem:[%s2243_s0 + $0x3c8] sm:$0xff] }
  0xd6   :  { %826 = vst.msk [vmem:[%s2246_s3 + $0x100] sm:$0xff] %vm793_vm1, %v697_v15  ;;  %593 = vadd.xlane.f32.xlu0 %v592_v11  ;;  %v387_v18 = vpop.xlane.xlu1 %386  ;;  %v269_v11 = vmul.f32 %v1637_v0, %v133_v5  ;;  %v135_v15 = vld [vmem:[%s2243_s0 + $0x3c0] sm:$0xff] }
  0xd7   :  { %v384_v19 = vpop.xlane.xlu0 %383  ;;  %v700_v24 = vadd.f32 %v1330_v34, %v387_v18  ;;  %v637_v18 = vsel %vm279_vm0, %v270_v10, 0.0 }
  0xd8   :  { %v699_v25 = vadd.f32 %v1330_v34, %v384_v19  ;;  %v634_v19 = vsel %vm279_vm0, %v269_v11, 0.0 }
  0xd9   :  { %829 = vst.msk [vmem:[%s2246_s3 + $0x118] sm:$0xff] %vm793_vm1, %v700_v24  ;;  %602 = vadd.xlane.f32.xlu1 %v601_v20  ;;  %v272_v20 = vmul.f32 %v1637_v0, %v136_v14  ;;  %v138_v24 = vld [vmem:[%s2243_s0 + $0x3d8] sm:$0xff] }
  0xda   :  { %828 = vst.msk [vmem:[%s2246_s3 + $0x110] sm:$0xff] %vm793_vm1, %v699_v25  ;;  %599 = vadd.xlane.f32.xlu0 %v598_v21  ;;  %v393_v28 = vpop.xlane.xlu1 %392  ;;  %v271_v21 = vmul.f32 %v1637_v0, %v135_v15  ;;  %v137_v25 = vld [vmem:[%s2243_s0 + $0x3d0] sm:$0xff] }
  0xdb   :  { %v390_v29 = vpop.xlane.xlu0 %389  ;;  %v702_v35 = vadd.f32 %v1330_v34, %v393_v28  ;;  %v643_v28 = vsel %vm279_vm0, %v272_v20, 0.0 }
  0xdc   :  { %v701_v36 = vadd.f32 %v1330_v34, %v390_v29  ;;  %v640_v29 = vsel %vm279_vm0, %v271_v21, 0.0 }
  0xdd   :  { %831 = vst.msk [vmem:[%s2246_s3 + $0x128] sm:$0xff] %vm793_vm1, %v702_v35  ;;  %608 = vadd.xlane.f32.xlu1 %v607_v30  ;;  %v274_v30 = vmul.f32 %v1637_v0, %v138_v24  ;;  %v140_v35 = vld [vmem:[%s2243_s0 + $0x3e8] sm:$0xff] }
  0xde   :  { %830 = vst.msk [vmem:[%s2246_s3 + $0x120] sm:$0xff] %vm793_vm1, %v701_v36  ;;  %605 = vadd.xlane.f32.xlu0 %v604_v31  ;;  %v399_v39 = vpop.xlane.xlu1 %398  ;;  %v273_v31 = vmul.f32 %v1637_v0, %v137_v25  ;;  %v139_v36 = vld [vmem:[%s2243_s0 + $0x3e0] sm:$0xff] }
  0xdf   :  { %v396_v40 = vpop.xlane.xlu0 %395  ;;  %v704_v45 = vadd.f32 %v1330_v34, %v399_v39  ;;  %v649_v39 = vsel %vm279_vm0, %v274_v30, 0.0 }
  0xe0   :  { %v703_v46 = vadd.f32 %v1330_v34, %v396_v40  ;;  %v646_v40 = vsel %vm279_vm0, %v273_v31, 0.0 }
  0xe1   :  { %833 = vst.msk [vmem:[%s2246_s3 + $0x138] sm:$0xff] %vm793_vm1, %v704_v45  ;;  %614 = vadd.xlane.f32.xlu1 %v613_v41  ;;  %v276_v41 = vmul.f32 %v1637_v0, %v140_v35  ;;  %v142_v45 = vld [vmem:[%s2243_s0 + $0x3f8] sm:$0xff] }
  0xe2   :  { %832 = vst.msk [vmem:[%s2246_s3 + $0x130] sm:$0xff] %vm793_vm1, %v703_v46  ;;  %611 = vadd.xlane.f32.xlu0 %v610_v42  ;;  %v405_v49 = vpop.xlane.xlu1 %404  ;;  %v275_v42 = vmul.f32 %v1637_v0, %v139_v36  ;;  %v141_v46 = vld [vmem:[%s2243_s0 + $0x3f0] sm:$0xff] }
  0xe3   :  { %v402_v50 = vpop.xlane.xlu0 %401  ;;  %v706_v55 = vadd.f32 %v1330_v34, %v405_v49  ;;  %v655_v49 = vsel %vm279_vm0, %v276_v41, 0.0 }
  0xe4   :  { %v705_v56 = vadd.f32 %v1330_v34, %v402_v50  ;;  %v652_v50 = vsel %vm279_vm0, %v275_v42, 0.0 }
  0xe5   :  { %835 = vst.msk [vmem:[%s2246_s3 + $0x148] sm:$0xff] %vm793_vm1, %v706_v55  ;;  %620 = vadd.xlane.f32.xlu1 %v619_v51  ;;  %v278_v51 = vmul.f32 %v1637_v0, %v142_v45 }
  0xe6   :  { %834 = vst.msk [vmem:[%s2246_s3 + $0x140] sm:$0xff] %vm793_vm1, %v705_v56  ;;  %617 = vadd.xlane.f32.xlu0 %v616_v52  ;;  %v411_v59 = vpop.xlane.xlu1 %410  ;;  %v277_v52 = vmul.f32 %v1637_v0, %v141_v46 }
  0xe7   :  { %v408_v60 = vpop.xlane.xlu0 %407  ;;  %v708_v2 = vadd.f32 %v1330_v34, %v411_v59  ;;  %v661_v0 = vsel %vm279_vm0, %v278_v51, 0.0 }
  0xe8   :  { %v707_v3 = vadd.f32 %v1330_v34, %v408_v60  ;;  %v658_v57 = vsel %vm279_vm0, %v277_v52, 0.0 }
  0xe9   :  { %837 = vst.msk [vmem:[%s2246_s3 + $0x158] sm:$0xff] %vm793_vm1, %v708_v2  ;;  %626 = vadd.xlane.f32.xlu1 %v625_v1 }
  0xea   :  { %836 = vst.msk [vmem:[%s2246_s3 + $0x150] sm:$0xff] %vm793_vm1, %v707_v3  ;;  %623 = vadd.xlane.f32.xlu0 %v622_v61  ;;  %v417_v6 = vpop.xlane.xlu1 %416 }
  0xeb   :  { %v414_v7 = vpop.xlane.xlu0 %413  ;;  %v710_v12 = vadd.f32 %v1330_v34, %v417_v6 }
  0xec   :  { %v709_v13 = vadd.f32 %v1330_v34, %v414_v7 }
  0xed   :  { %839 = vst.msk [vmem:[%s2246_s3 + $0x168] sm:$0xff] %vm793_vm1, %v710_v12  ;;  %632 = vadd.xlane.f32.xlu1 %v631_v8 }
  0xee   :  { %838 = vst.msk [vmem:[%s2246_s3 + $0x160] sm:$0xff] %vm793_vm1, %v709_v13  ;;  %629 = vadd.xlane.f32.xlu0 %v628_v9  ;;  %v423_v16 = vpop.xlane.xlu1 %422 }
  0xef   :  { %v420_v17 = vpop.xlane.xlu0 %419  ;;  %v712_v22 = vadd.f32 %v1330_v34, %v423_v16 }
  0xf0   :  { %v711_v23 = vadd.f32 %v1330_v34, %v420_v17 }
  0xf1   :  { %841 = vst.msk [vmem:[%s2246_s3 + $0x178] sm:$0xff] %vm793_vm1, %v712_v22  ;;  %638 = vadd.xlane.f32.xlu1 %v637_v18 }
  0xf2   :  { %840 = vst.msk [vmem:[%s2246_s3 + $0x170] sm:$0xff] %vm793_vm1, %v711_v23  ;;  %635 = vadd.xlane.f32.xlu0 %v634_v19  ;;  %v429_v26 = vpop.xlane.xlu1 %428 }
  0xf3   :  { %v426_v27 = vpop.xlane.xlu0 %425  ;;  %v714_v32 = vadd.f32 %v1330_v34, %v429_v26 }
  0xf4   :  { %v713_v33 = vadd.f32 %v1330_v34, %v426_v27 }
  0xf5   :  { %843 = vst.msk [vmem:[%s2246_s3 + $0x188] sm:$0xff] %vm793_vm1, %v714_v32  ;;  %644 = vadd.xlane.f32.xlu1 %v643_v28 }
  0xf6   :  { %842 = vst.msk [vmem:[%s2246_s3 + $0x180] sm:$0xff] %vm793_vm1, %v713_v33  ;;  %641 = vadd.xlane.f32.xlu0 %v640_v29  ;;  %v435_v37 = vpop.xlane.xlu1 %434 }
  0xf7   :  { %v432_v38 = vpop.xlane.xlu0 %431  ;;  %v716_v43 = vadd.f32 %v1330_v34, %v435_v37 }
  0xf8   :  { %v715_v44 = vadd.f32 %v1330_v34, %v432_v38 }
  0xf9   :  { %845 = vst.msk [vmem:[%s2246_s3 + $0x198] sm:$0xff] %vm793_vm1, %v716_v43  ;;  %650 = vadd.xlane.f32.xlu1 %v649_v39 }
  0xfa   :  { %844 = vst.msk [vmem:[%s2246_s3 + $0x190] sm:$0xff] %vm793_vm1, %v715_v44  ;;  %647 = vadd.xlane.f32.xlu0 %v646_v40  ;;  %v441_v47 = vpop.xlane.xlu1 %440 }
  0xfb   :  { %v438_v48 = vpop.xlane.xlu0 %437  ;;  %v718_v53 = vadd.f32 %v1330_v34, %v441_v47 }
  0xfc   :  { %v717_v54 = vadd.f32 %v1330_v34, %v438_v48 }
  0xfd   :  { %847 = vst.msk [vmem:[%s2246_s3 + $0x1a8] sm:$0xff] %vm793_vm1, %v718_v53  ;;  %656 = vadd.xlane.f32.xlu1 %v655_v49 }
  0xfe   :  { %846 = vst.msk [vmem:[%s2246_s3 + $0x1a0] sm:$0xff] %vm793_vm1, %v717_v54  ;;  %653 = vadd.xlane.f32.xlu0 %v652_v50  ;;  %v447_v55 = vpop.xlane.xlu1 %446 }
  0xff   :  { %v444_v56 = vpop.xlane.xlu0 %443  ;;  %v720_v58 = vadd.f32 %v1330_v34, %v447_v55 }
 0x100   :  { %v719_v59 = vadd.f32 %v1330_v34, %v444_v56 }
 0x101   :  { %849 = vst.msk [vmem:[%s2246_s3 + $0x1b8] sm:$0xff] %vm793_vm1, %v720_v58  ;;  %662 = vadd.xlane.f32.xlu1 %v661_v0 }
 0x102   :  { %848 = vst.msk [vmem:[%s2246_s3 + $0x1b0] sm:$0xff] %vm793_vm1, %v719_v59  ;;  %659 = vadd.xlane.f32.xlu0 %v658_v57  ;;  %v453_v60 = vpop.xlane.xlu1 %452 }
 0x103   :  { %v450_v1 = vpop.xlane.xlu0 %449  ;;  %v722_v61 = vadd.f32 %v1330_v34, %v453_v60 }
 0x104   :  { %v721_v62 = vadd.f32 %v1330_v34, %v450_v1 }
 0x105   :  { %851 = vst.msk [vmem:[%s2246_s3 + $0x1c8] sm:$0xff] %vm793_vm1, %v722_v61 }
 0x106   :  { %850 = vst.msk [vmem:[%s2246_s3 + $0x1c0] sm:$0xff] %vm793_vm1, %v721_v62  ;;  %v459_v63 = vpop.xlane.xlu1 %458 }
 0x107   :  { %v456_v2 = vpop.xlane.xlu0 %455  ;;  %v724_v3 = vadd.f32 %v1330_v34, %v459_v63 }
 0x108   :  { %v723_v4 = vadd.f32 %v1330_v34, %v456_v2 }
 0x109   :  { %853 = vst.msk [vmem:[%s2246_s3 + $0x1d8] sm:$0xff] %vm793_vm1, %v724_v3 }
 0x10a   :  { %852 = vst.msk [vmem:[%s2246_s3 + $0x1d0] sm:$0xff] %vm793_vm1, %v723_v4  ;;  %v465_v5 = vpop.xlane.xlu1 %464 }
 0x10b   :  { %v462_v6 = vpop.xlane.xlu0 %461  ;;  %v726_v7 = vadd.f32 %v1330_v34, %v465_v5 }
 0x10c   :  { %v725_v8 = vadd.f32 %v1330_v34, %v462_v6 }
 0x10d   :  { %855 = vst.msk [vmem:[%s2246_s3 + $0x1e8] sm:$0xff] %vm793_vm1, %v726_v7 }
 0x10e   :  { %854 = vst.msk [vmem:[%s2246_s3 + $0x1e0] sm:$0xff] %vm793_vm1, %v725_v8  ;;  %v471_v9 = vpop.xlane.xlu1 %470 }
 0x10f   :  { %v468_v10 = vpop.xlane.xlu0 %467  ;;  %v728_v11 = vadd.f32 %v1330_v34, %v471_v9 }
 0x110   :  { %v727_v12 = vadd.f32 %v1330_v34, %v468_v10 }
 0x111   :  { %857 = vst.msk [vmem:[%s2246_s3 + $0x1f8] sm:$0xff] %vm793_vm1, %v728_v11 }
 0x112   :  { %856 = vst.msk [vmem:[%s2246_s3 + $0x1f0] sm:$0xff] %vm793_vm1, %v727_v12  ;;  %v477_v13 = vpop.xlane.xlu1 %476 }
 0x113   :  { %v474_v14 = vpop.xlane.xlu0 %473  ;;  %v730_v15 = vadd.f32 %v1330_v34, %v477_v13 }
 0x114   :  { %v729_v16 = vadd.f32 %v1330_v34, %v474_v14 }
 0x115   :  { %859 = vst.msk [vmem:[%s2246_s3 + $0x208] sm:$0xff] %vm793_vm1, %v730_v15 }
 0x116   :  { %858 = vst.msk [vmem:[%s2246_s3 + $0x200] sm:$0xff] %vm793_vm1, %v729_v16  ;;  %v483_v17 = vpop.xlane.xlu1 %482 }
 0x117   :  { %v480_v18 = vpop.xlane.xlu0 %479  ;;  %v732_v19 = vadd.f32 %v1330_v34, %v483_v17 }
 0x118   :  { %v731_v20 = vadd.f32 %v1330_v34, %v480_v18 }
 0x119   :  { %861 = vst.msk [vmem:[%s2246_s3 + $0x218] sm:$0xff] %vm793_vm1, %v732_v19 }
 0x11a   :  { %860 = vst.msk [vmem:[%s2246_s3 + $0x210] sm:$0xff] %vm793_vm1, %v731_v20  ;;  %v489_v21 = vpop.xlane.xlu1 %488 }
 0x11b   :  { %v486_v22 = vpop.xlane.xlu0 %485  ;;  %v734_v23 = vadd.f32 %v1330_v34, %v489_v21 }
 0x11c   :  { %v733_v24 = vadd.f32 %v1330_v34, %v486_v22 }
 0x11d   :  { %863 = vst.msk [vmem:[%s2246_s3 + $0x228] sm:$0xff] %vm793_vm1, %v734_v23 }
 0x11e   :  { %862 = vst.msk [vmem:[%s2246_s3 + $0x220] sm:$0xff] %vm793_vm1, %v733_v24  ;;  %v495_v25 = vpop.xlane.xlu1 %494 }
 0x11f   :  { %v492_v26 = vpop.xlane.xlu0 %491  ;;  %v736_v27 = vadd.f32 %v1330_v34, %v495_v25 }
 0x120   :  { %v735_v28 = vadd.f32 %v1330_v34, %v492_v26 }
 0x121   :  { %865 = vst.msk [vmem:[%s2246_s3 + $0x238] sm:$0xff] %vm793_vm1, %v736_v27 }
 0x122   :  { %864 = vst.msk [vmem:[%s2246_s3 + $0x230] sm:$0xff] %vm793_vm1, %v735_v28  ;;  %v501_v29 = vpop.xlane.xlu1 %500 }
 0x123   :  { %v498_v30 = vpop.xlane.xlu0 %497  ;;  %v738_v31 = vadd.f32 %v1330_v34, %v501_v29 }
 0x124   :  { %v737_v32 = vadd.f32 %v1330_v34, %v498_v30 }
 0x125   :  { %867 = vst.msk [vmem:[%s2246_s3 + $0x248] sm:$0xff] %vm793_vm1, %v738_v31 }
 0x126   :  { %866 = vst.msk [vmem:[%s2246_s3 + $0x240] sm:$0xff] %vm793_vm1, %v737_v32  ;;  %v507_v33 = vpop.xlane.xlu1 %506 }
 0x127   :  { %v504_v35 = vpop.xlane.xlu0 %503  ;;  %v740_v36 = vadd.f32 %v1330_v34, %v507_v33 }
 0x128   :  { %v739_v37 = vadd.f32 %v1330_v34, %v504_v35 }
 0x129   :  { %869 = vst.msk [vmem:[%s2246_s3 + $0x258] sm:$0xff] %vm793_vm1, %v740_v36 }
 0x12a   :  { %868 = vst.msk [vmem:[%s2246_s3 + $0x250] sm:$0xff] %vm793_vm1, %v739_v37  ;;  %v513_v38 = vpop.xlane.xlu1 %512 }
 0x12b   :  { %v510_v39 = vpop.xlane.xlu0 %509  ;;  %v742_v40 = vadd.f32 %v1330_v34, %v513_v38 }
 0x12c   :  { %v741_v41 = vadd.f32 %v1330_v34, %v510_v39 }
 0x12d   :  { %871 = vst.msk [vmem:[%s2246_s3 + $0x268] sm:$0xff] %vm793_vm1, %v742_v40 }
 0x12e   :  { %870 = vst.msk [vmem:[%s2246_s3 + $0x260] sm:$0xff] %vm793_vm1, %v741_v41  ;;  %v519_v42 = vpop.xlane.xlu1 %518 }
 0x12f   :  { %v516_v43 = vpop.xlane.xlu0 %515  ;;  %v744_v44 = vadd.f32 %v1330_v34, %v519_v42 }
 0x130   :  { %v743_v45 = vadd.f32 %v1330_v34, %v516_v43 }
 0x131   :  { %873 = vst.msk [vmem:[%s2246_s3 + $0x278] sm:$0xff] %vm793_vm1, %v744_v44 }
 0x132   :  { %872 = vst.msk [vmem:[%s2246_s3 + $0x270] sm:$0xff] %vm793_vm1, %v743_v45  ;;  %v525_v46 = vpop.xlane.xlu1 %524 }
 0x133   :  { %v522_v47 = vpop.xlane.xlu0 %521  ;;  %v746_v48 = vadd.f32 %v1330_v34, %v525_v46 }
 0x134   :  { %v745_v49 = vadd.f32 %v1330_v34, %v522_v47 }
 0x135   :  { %875 = vst.msk [vmem:[%s2246_s3 + $0x288] sm:$0xff] %vm793_vm1, %v746_v48 }
 0x136   :  { %874 = vst.msk [vmem:[%s2246_s3 + $0x280] sm:$0xff] %vm793_vm1, %v745_v49  ;;  %v531_v50 = vpop.xlane.xlu1 %530 }
 0x137   :  { %v528_v51 = vpop.xlane.xlu0 %527  ;;  %v748_v52 = vadd.f32 %v1330_v34, %v531_v50 }
 0x138   :  { %v747_v53 = vadd.f32 %v1330_v34, %v528_v51 }
 0x139   :  { %877 = vst.msk [vmem:[%s2246_s3 + $0x298] sm:$0xff] %vm793_vm1, %v748_v52 }
 0x13a   :  { %876 = vst.msk [vmem:[%s2246_s3 + $0x290] sm:$0xff] %vm793_vm1, %v747_v53  ;;  %v537_v54 = vpop.xlane.xlu1 %536 }
 0x13b   :  { %v534_v55 = vpop.xlane.xlu0 %533  ;;  %v750_v56 = vadd.f32 %v1330_v34, %v537_v54 }
 0x13c   :  { %v749_v0 = vadd.f32 %v1330_v34, %v534_v55 }
 0x13d   :  { %879 = vst.msk [vmem:[%s2246_s3 + $0x2a8] sm:$0xff] %vm793_vm1, %v750_v56 }
 0x13e   :  { %878 = vst.msk [vmem:[%s2246_s3 + $0x2a0] sm:$0xff] %vm793_vm1, %v749_v0  ;;  %v543_v57 = vpop.xlane.xlu1 %542 }
 0x13f   :  { %v540_v58 = vpop.xlane.xlu0 %539  ;;  %v752_v59 = vadd.f32 %v1330_v34, %v543_v57 }
 0x140   :  { %v751_v60 = vadd.f32 %v1330_v34, %v540_v58 }
 0x141   :  { %881 = vst.msk [vmem:[%s2246_s3 + $0x2b8] sm:$0xff] %vm793_vm1, %v752_v59 }
 0x142   :  { %880 = vst.msk [vmem:[%s2246_s3 + $0x2b0] sm:$0xff] %vm793_vm1, %v751_v60  ;;  %v549_v1 = vpop.xlane.xlu1 %548 }
 0x143   :  { %v546_v61 = vpop.xlane.xlu0 %545  ;;  %v754_v62 = vadd.f32 %v1330_v34, %v549_v1 }
 0x144   :  { %v753_v63 = vadd.f32 %v1330_v34, %v546_v61 }
 0x145   :  { %883 = vst.msk [vmem:[%s2246_s3 + $0x2c8] sm:$0xff] %vm793_vm1, %v754_v62 }
 0x146   :  { %882 = vst.msk [vmem:[%s2246_s3 + $0x2c0] sm:$0xff] %vm793_vm1, %v753_v63  ;;  %v555_v2 = vpop.xlane.xlu1 %554 }
 0x147   :  { %v552_v3 = vpop.xlane.xlu0 %551  ;;  %v756_v4 = vadd.f32 %v1330_v34, %v555_v2 }
 0x148   :  { %v755_v5 = vadd.f32 %v1330_v34, %v552_v3 }
 0x149   :  { %885 = vst.msk [vmem:[%s2246_s3 + $0x2d8] sm:$0xff] %vm793_vm1, %v756_v4 }
 0x14a   :  { %884 = vst.msk [vmem:[%s2246_s3 + $0x2d0] sm:$0xff] %vm793_vm1, %v755_v5  ;;  %v561_v6 = vpop.xlane.xlu1 %560 }
 0x14b   :  { %v558_v7 = vpop.xlane.xlu0 %557  ;;  %v758_v8 = vadd.f32 %v1330_v34, %v561_v6 }
 0x14c   :  { %v757_v9 = vadd.f32 %v1330_v34, %v558_v7 }
 0x14d   :  { %887 = vst.msk [vmem:[%s2246_s3 + $0x2e8] sm:$0xff] %vm793_vm1, %v758_v8 }
 0x14e   :  { %886 = vst.msk [vmem:[%s2246_s3 + $0x2e0] sm:$0xff] %vm793_vm1, %v757_v9  ;;  %v567_v10 = vpop.xlane.xlu1 %566 }
 0x14f   :  { %v564_v11 = vpop.xlane.xlu0 %563  ;;  %v760_v12 = vadd.f32 %v1330_v34, %v567_v10 }
 0x150   :  { %v759_v13 = vadd.f32 %v1330_v34, %v564_v11 }
 0x151   :  { %889 = vst.msk [vmem:[%s2246_s3 + $0x2f8] sm:$0xff] %vm793_vm1, %v760_v12 }
 0x152   :  { %888 = vst.msk [vmem:[%s2246_s3 + $0x2f0] sm:$0xff] %vm793_vm1, %v759_v13  ;;  %v573_v14 = vpop.xlane.xlu1 %572 }
 0x153   :  { %v570_v15 = vpop.xlane.xlu0 %569  ;;  %v762_v16 = vadd.f32 %v1330_v34, %v573_v14 }
 0x154   :  { %v761_v17 = vadd.f32 %v1330_v34, %v570_v15 }
 0x155   :  { %891 = vst.msk [vmem:[%s2246_s3 + $0x308] sm:$0xff] %vm793_vm1, %v762_v16 }
 0x156   :  { %890 = vst.msk [vmem:[%s2246_s3 + $0x300] sm:$0xff] %vm793_vm1, %v761_v17  ;;  %v579_v18 = vpop.xlane.xlu1 %578 }
 0x157   :  { %v576_v19 = vpop.xlane.xlu0 %575  ;;  %v764_v20 = vadd.f32 %v1330_v34, %v579_v18 }
 0x158   :  { %v763_v21 = vadd.f32 %v1330_v34, %v576_v19 }
 0x159   :  { %893 = vst.msk [vmem:[%s2246_s3 + $0x318] sm:$0xff] %vm793_vm1, %v764_v20 }
 0x15a   :  { %892 = vst.msk [vmem:[%s2246_s3 + $0x310] sm:$0xff] %vm793_vm1, %v763_v21  ;;  %v585_v22 = vpop.xlane.xlu1 %584 }
 0x15b   :  { %v582_v23 = vpop.xlane.xlu0 %581  ;;  %v766_v24 = vadd.f32 %v1330_v34, %v585_v22 }
 0x15c   :  { %v765_v25 = vadd.f32 %v1330_v34, %v582_v23 }
 0x15d   :  { %895 = vst.msk [vmem:[%s2246_s3 + $0x328] sm:$0xff] %vm793_vm1, %v766_v24 }
 0x15e   :  { %894 = vst.msk [vmem:[%s2246_s3 + $0x320] sm:$0xff] %vm793_vm1, %v765_v25  ;;  %v591_v26 = vpop.xlane.xlu1 %590 }
 0x15f   :  { %v588_v27 = vpop.xlane.xlu0 %587  ;;  %v768_v28 = vadd.f32 %v1330_v34, %v591_v26 }
 0x160   :  { %v767_v29 = vadd.f32 %v1330_v34, %v588_v27 }
 0x161   :  { %897 = vst.msk [vmem:[%s2246_s3 + $0x338] sm:$0xff] %vm793_vm1, %v768_v28 }
 0x162   :  { %896 = vst.msk [vmem:[%s2246_s3 + $0x330] sm:$0xff] %vm793_vm1, %v767_v29  ;;  %v597_v30 = vpop.xlane.xlu1 %596 }
 0x163   :  { %v594_v31 = vpop.xlane.xlu0 %593  ;;  %v770_v32 = vadd.f32 %v1330_v34, %v597_v30 }
 0x164   :  { %v769_v33 = vadd.f32 %v1330_v34, %v594_v31 }
 0x165   :  { %899 = vst.msk [vmem:[%s2246_s3 + $0x348] sm:$0xff] %vm793_vm1, %v770_v32 }
 0x166   :  { %898 = vst.msk [vmem:[%s2246_s3 + $0x340] sm:$0xff] %vm793_vm1, %v769_v33  ;;  %v603_v35 = vpop.xlane.xlu1 %602 }
 0x167   :  { %v600_v36 = vpop.xlane.xlu0 %599  ;;  %v772_v37 = vadd.f32 %v1330_v34, %v603_v35 }
 0x168   :  { %v771_v38 = vadd.f32 %v1330_v34, %v600_v36 }
 0x169   :  { %901 = vst.msk [vmem:[%s2246_s3 + $0x358] sm:$0xff] %vm793_vm1, %v772_v37 }
 0x16a   :  { %900 = vst.msk [vmem:[%s2246_s3 + $0x350] sm:$0xff] %vm793_vm1, %v771_v38  ;;  %v609_v39 = vpop.xlane.xlu1 %608 }
 0x16b   :  { %v606_v40 = vpop.xlane.xlu0 %605  ;;  %v774_v41 = vadd.f32 %v1330_v34, %v609_v39 }
 0x16c   :  { %v773_v42 = vadd.f32 %v1330_v34, %v606_v40 }
 0x16d   :  { %903 = vst.msk [vmem:[%s2246_s3 + $0x368] sm:$0xff] %vm793_vm1, %v774_v41 }
 0x16e   :  { %902 = vst.msk [vmem:[%s2246_s3 + $0x360] sm:$0xff] %vm793_vm1, %v773_v42  ;;  %v615_v43 = vpop.xlane.xlu1 %614 }
 0x16f   :  { %v612_v44 = vpop.xlane.xlu0 %611  ;;  %v776_v45 = vadd.f32 %v1330_v34, %v615_v43 }
 0x170   :  { %v775_v46 = vadd.f32 %v1330_v34, %v612_v44 }
 0x171   :  { %905 = vst.msk [vmem:[%s2246_s3 + $0x378] sm:$0xff] %vm793_vm1, %v776_v45 }
 0x172   :  { %904 = vst.msk [vmem:[%s2246_s3 + $0x370] sm:$0xff] %vm793_vm1, %v775_v46  ;;  %v621_v47 = vpop.xlane.xlu1 %620 }
 0x173   :  { %v618_v48 = vpop.xlane.xlu0 %617  ;;  %v778_v49 = vadd.f32 %v1330_v34, %v621_v47 }
 0x174   :  { %v777_v50 = vadd.f32 %v1330_v34, %v618_v48 }
 0x175   :  { %907 = vst.msk [vmem:[%s2246_s3 + $0x388] sm:$0xff] %vm793_vm1, %v778_v49 }
 0x176   :  { %906 = vst.msk [vmem:[%s2246_s3 + $0x380] sm:$0xff] %vm793_vm1, %v777_v50  ;;  %v627_v51 = vpop.xlane.xlu1 %626 }
 0x177   :  { %v624_v52 = vpop.xlane.xlu0 %623  ;;  %v780_v53 = vadd.f32 %v1330_v34, %v627_v51 }
 0x178   :  { %v779_v54 = vadd.f32 %v1330_v34, %v624_v52 }
 0x179   :  { %909 = vst.msk [vmem:[%s2246_s3 + $0x398] sm:$0xff] %vm793_vm1, %v780_v53 }
 0x17a   :  { %908 = vst.msk [vmem:[%s2246_s3 + $0x390] sm:$0xff] %vm793_vm1, %v779_v54  ;;  %v633_v55 = vpop.xlane.xlu1 %632 }
 0x17b   :  { %v630_v56 = vpop.xlane.xlu0 %629  ;;  %v782_v0 = vadd.f32 %v1330_v34, %v633_v55 }
 0x17c   :  { %v781_v57 = vadd.f32 %v1330_v34, %v630_v56 }
 0x17d   :  { %911 = vst.msk [vmem:[%s2246_s3 + $0x3a8] sm:$0xff] %vm793_vm1, %v782_v0 }
 0x17e   :  { %910 = vst.msk [vmem:[%s2246_s3 + $0x3a0] sm:$0xff] %vm793_vm1, %v781_v57  ;;  %v639_v58 = vpop.xlane.xlu1 %638 }
 0x17f   :  { %v636_v59 = vpop.xlane.xlu0 %635  ;;  %v784_v60 = vadd.f32 %v1330_v34, %v639_v58 }
 0x180   :  { %v783_v1 = vadd.f32 %v1330_v34, %v636_v59 }
 0x181   :  { %913 = vst.msk [vmem:[%s2246_s3 + $0x3b8] sm:$0xff] %vm793_vm1, %v784_v60 }
 0x182   :  { %912 = vst.msk [vmem:[%s2246_s3 + $0x3b0] sm:$0xff] %vm793_vm1, %v783_v1  ;;  %v645_v61 = vpop.xlane.xlu1 %644 }
 0x183   :  { %v642_v62 = vpop.xlane.xlu0 %641  ;;  %v786_v63 = vadd.f32 %v1330_v34, %v645_v61 }
 0x184   :  { %v785_v2 = vadd.f32 %v1330_v34, %v642_v62 }
 0x185   :  { %915 = vst.msk [vmem:[%s2246_s3 + $0x3c8] sm:$0xff] %vm793_vm1, %v786_v63 }
 0x186   :  { %914 = vst.msk [vmem:[%s2246_s3 + $0x3c0] sm:$0xff] %vm793_vm1, %v785_v2  ;;  %v651_v3 = vpop.xlane.xlu1 %650 }
 0x187   :  { %v648_v4 = vpop.xlane.xlu0 %647  ;;  %v788_v5 = vadd.f32 %v1330_v34, %v651_v3 }
 0x188   :  { %v787_v6 = vadd.f32 %v1330_v34, %v648_v4 }
 0x189   :  { %917 = vst.msk [vmem:[%s2246_s3 + $0x3d8] sm:$0xff] %vm793_vm1, %v788_v5 }
 0x18a   :  { %916 = vst.msk [vmem:[%s2246_s3 + $0x3d0] sm:$0xff] %vm793_vm1, %v787_v6  ;;  %v657_v7 = vpop.xlane.xlu1 %656 }
 0x18b   :  { %v654_v8 = vpop.xlane.xlu0 %653  ;;  %v790_v9 = vadd.f32 %v1330_v34, %v657_v7 }
 0x18c   :  { %v789_v10 = vadd.f32 %v1330_v34, %v654_v8 }
 0x18d   :  { %919 = vst.msk [vmem:[%s2246_s3 + $0x3e8] sm:$0xff] %vm793_vm1, %v790_v9 }
 0x18e   :  { %918 = vst.msk [vmem:[%s2246_s3 + $0x3e0] sm:$0xff] %vm793_vm1, %v789_v10  ;;  %v663_v11 = vpop.xlane.xlu1 %662 }
 0x18f   :  { %v660_v12 = vpop.xlane.xlu0 %659  ;;  %v792_v13 = vadd.f32 %v1330_v34, %v663_v11 }
 0x190   :  { %v791_v14 = vadd.f32 %v1330_v34, %v660_v12 }
 0x191   :  { %921 = vst.msk [vmem:[%s2246_s3 + $0x3f8] sm:$0xff] %vm793_vm1, %v792_v13 }
 0x192   :  { %920 = vst.msk [vmem:[%s2246_s3 + $0x3f0] sm:$0xff] %vm793_vm1, %v791_v14 }

</bundles_post_ra>
